<compile_context>
chip_gen: v7x
topology: tpu7x:2x2x1
jax: 0.10.0
libtpu: 0.0.40
codegen_flags: <defaults>
</compile_context>

<pallas_src>
import functools

import jax
import jax.numpy as jnp
import numpy as np
from jax.experimental import pallas as pl
from jax.experimental.pallas import tpu as pltpu

# Explicit scoped-VMEM limit (v5e default is only 16 MiB; 48 MiB is safe on all of
# v5e/v6e (128 MiB physical) and v7x (64 MiB physical)).
_VMEM_LIMIT = 48 * 1024 * 1024
# Budget used when picking row tiles (leave headroom for weights, scratch,
# compiler-internal buffers and double/triple buffering).
_TILE_VMEM_BUDGET = 24 * 1024 * 1024


def _pick_tile(m, row_bytes, budget=_TILE_VMEM_BUDGET,
               candidates=(2048, 1024, 512, 256, 128, 64, 32, 16, 8)):
    """Largest row tile that fits the VMEM budget.  Prefers a divisor of m; if
    none divides, the caller uses a cdiv grid and the edge block is masked (no
    whole-array fallback that could blow VMEM)."""
    cands = [t for t in candidates if t <= m and t * row_bytes <= budget]
    if not cands:
        return min(m, 8)
    for t in cands:
        if m % t == 0:
            return t
    return cands[0]


# ----------------------------------------------------------------------------
# Kernel 1: proj_in (1x1 conv dim -> 2*dim); single wide MXU dot, split in-kernel.
# ----------------------------------------------------------------------------
def _proj_in_kernel(x_ref, w_ref, b_ref, pwa_ref, abc_ref, *, d0):
    fused = (jnp.dot(x_ref[...], w_ref[...], preferred_element_type=jnp.float32)
             + b_ref[...])
    pwa_ref[...] = fused[:, :d0].astype(pwa_ref.dtype)
    abc_ref[...] = fused[:, d0:].astype(abc_ref.dtype)


def proj_in_conv(x2d, w, b, d0, tm):
    M, cin = x2d.shape
    c2 = w.shape[1]
    sd = c2 - d0
    steps = (M + tm - 1) // tm
    kern = functools.partial(_proj_in_kernel, d0=d0)
    return pl.pallas_call(
        kern,
        out_shape=(jax.ShapeDtypeStruct((M, d0), x2d.dtype),
                   jax.ShapeDtypeStruct((M, sd), x2d.dtype)),
        grid=(steps,),
        in_specs=[
            pl.BlockSpec((tm, cin), lambda i: (i, 0)),
            pl.BlockSpec((cin, c2), lambda i: (0, 0)),
            pl.BlockSpec((1, c2), lambda i: (0, 0)),
        ],
        out_specs=(pl.BlockSpec((tm, d0), lambda i: (i, 0)),
                   pl.BlockSpec((tm, sd), lambda i: (i, 0))),
        compiler_params=pltpu.CompilerParams(
            dimension_semantics=("parallel",),
            vmem_limit_bytes=_VMEM_LIMIT),
    )(x2d, w, b.reshape(1, c2))


# ----------------------------------------------------------------------------
# Kernel 2: depthwise 7x7 conv (groups == channels), bias, scale pre-folded.
# One lane-dense output slab of width sum(dims); channel split happens later in
# VMEM inside the gate-chain kernel (avoids masked vst.msk HBM stores).
# ----------------------------------------------------------------------------
def _dw_kernel(x_ref, w_ref, b_ref, o_ref, xpad, *, H, W, K):
    pad = (K - 1) // 2
    C = x_ref.shape[-1]
    Hp, Wp = H + 2 * pad, W + 2 * pad

    # Zero only the halo strips (interior is fully overwritten every step).
    # Done every step (not once at program_id==0): with a "parallel" grid axis
    # on megacore each core has its own scratch and only one sees step 0.
    z_row = jnp.zeros((1, pad, Wp, C), x_ref.dtype)
    xpad[:, :pad, :, :] = z_row
    xpad[:, Hp - pad:, :, :] = z_row
    z_col = jnp.zeros((1, H, pad, C), x_ref.dtype)
    xpad[:, pad:pad + H, :pad, :] = z_col
    xpad[:, pad:pad + H, Wp - pad:, :] = z_col

    # Interior write (scratch kept in the streaming dtype to halve VMEM traffic).
    xpad[:, pad:pad + H, pad:pad + W, :] = x_ref[...]

    w = w_ref[...]                                  # (K, K, C) f32
    acc = jnp.zeros((1, H, W, C), jnp.float32)
    for kw in range(K):
        # One unaligned sublane slice per kw (7 total instead of 49); the kh
        # offset below is a leading-axis slice of the loaded value and is free.
        xs = xpad[:, :, kw:kw + W, :]
        for kh in range(K):
            acc = acc + xs[:, kh:kh + H, :, :] * w[kh, kw, :]
    o_ref[...] = (acc + b_ref[...]).astype(o_ref.dtype)
    # TODO(synk): for production HorNet sizes on v7x (64 MiB VMEM), tile along H
    # with halos (grid=(N, H//th)) so the f32 accumulator stays in vregs.


def depthwise_conv(x_nhwc, w, b):
    N, H, W, C = x_nhwc.shape
    K = w.shape[0]
    pad = (K - 1) // 2
    kern = functools.partial(_dw_kernel, H=H, W=W, K=K)
    return pl.pallas_call(
        kern,
        out_shape=jax.ShapeDtypeStruct((N, H, W, C), x_nhwc.dtype),
        grid=(N,),
        in_specs=[
            pl.BlockSpec((1, H, W, C), lambda n: (n, 0, 0, 0)),
            pl.BlockSpec((K, K, C), lambda n: (0, 0, 0)),
            pl.BlockSpec((1, C), lambda n: (0, 0)),
        ],
        out_specs=pl.BlockSpec((1, H, W, C), lambda n: (n, 0, 0, 0)),
        scratch_shapes=[pltpu.VMEM((1, H + 2 * pad, W + 2 * pad, C), x_nhwc.dtype)],
        compiler_params=pltpu.CompilerParams(
            dimension_semantics=("parallel",),
            vmem_limit_bytes=_VMEM_LIMIT),
    )(x_nhwc, w, b.reshape(1, C))


# ----------------------------------------------------------------------------
# Kernel 3: fused gating chain + proj_out over M tiles.
#   y = pwa * dw0 ; for i: y = (y @ W_i + b_i) * dw_{i+1} ; out = y @ Wout + bout
# Channel split of the concatenated dw slab happens here, in VMEM.  MXU dots run
# in the compute dtype with f32 accumulation (preferred_element_type).
# ----------------------------------------------------------------------------
def _gate_chain_kernel(*refs, dims):
    order = len(dims)
    pwa_ref, dw_ref = refs[0], refs[1]
    k = 2
    pw_refs = refs[k:k + 2 * (order - 1)]
    k += 2 * (order - 1)
    wout_ref, bout_ref, o_ref = refs[k], refs[k + 1], refs[k + 2]

    offs = [0]
    for d in dims:
        offs.append(offs[-1] + d)

    dw = dw_ref[...]
    y = pwa_ref[...] * dw[:, offs[0]:offs[1]]
    for i in range(order - 1):
        w = pw_refs[2 * i][...]
        b = pw_refs[2 * i + 1][...]                       # f32 bias
        y = jnp.dot(y, w, preferred_element_type=jnp.float32) + b
        y = y.astype(w.dtype) * dw[:, offs[i + 1]:offs[i + 2]]
    out = (jnp.dot(y.astype(wout_ref.dtype), wout_ref[...],
                   preferred_element_type=jnp.float32) + bout_ref[...])
    o_ref[...] = out.astype(o_ref.dtype)


def gate_chain(pwa, dw2d, pw_ws, pw_bs, w_out, b_out, dims, tm, deep_buffer):
    M, d0 = pwa.shape
    sd = dw2d.shape[1]
    cout = w_out.shape[1]
    steps = (M + tm - 1) // tm

    # Deeper pipelining on the HBM-streamed inputs when the grid is long enough.
    stream_kw = {}
    if deep_buffer and steps >= 3:
        stream_kw = dict(pipeline_mode=pl.Buffered(3))

    in_arrays = [pwa, dw2d]
    in_specs = [pl.BlockSpec((tm, d0), lambda i: (i, 0), **stream_kw),
                pl.BlockSpec((tm, sd), lambda i: (i, 0), **stream_kw)]
    for w, b in zip(pw_ws, pw_bs):
        b2 = b.reshape(1, -1)
        in_arrays += [w, b2]
        in_specs += [pl.BlockSpec(w.shape, lambda i: (0, 0)),
                     pl.BlockSpec(b2.shape, lambda i: (0, 0))]
    b_out2 = b_out.reshape(1, -1)
    in_arrays += [w_out, b_out2]
    in_specs += [pl.BlockSpec(w_out.shape, lambda i: (0, 0)),
                 pl.BlockSpec(b_out2.shape, lambda i: (0, 0))]

    kern = functools.partial(_gate_chain_kernel, dims=tuple(dims))
    return pl.pallas_call(
        kern,
        out_shape=jax.ShapeDtypeStruct((M, cout), pwa.dtype),
        grid=(steps,),
        in_specs=in_specs,
        out_specs=pl.BlockSpec((tm, cout), lambda i: (i, 0)),
        compiler_params=pltpu.CompilerParams(
            dimension_semantics=("parallel",),
            vmem_limit_bytes=_VMEM_LIMIT),
    )(*in_arrays)


# ----------------------------------------------------------------------------
# gnconv forward (glue in plain JAX, hot paths in Pallas)
# ----------------------------------------------------------------------------
def init_gnconv_params(dim, order=3, seed=0):
    dims = [dim // 2 ** i for i in range(order)]
    dims.reverse()
    sd = sum(dims)
    keys = jax.random.split(jax.random.PRNGKey(seed), 6 + 2 * (order - 1))
    params = {
        "dims": dims,
        "proj_in_w": 0.1 * jax.random.normal(keys[0], (dim, 2 * dim), jnp.float32),
        "proj_in_b": 0.1 * jax.random.normal(keys[1], (2 * dim,), jnp.float32),
        "dw_w": 0.05 * jax.random.normal(keys[2], (7, 7, sd), jnp.float32),
        "dw_b": 0.05 * jax.random.normal(keys[3], (sd,), jnp.float32),
        "proj_out_w": 0.1 * jax.random.normal(keys[4], (dim, dim), jnp.float32),
        "proj_out_b": 0.1 * jax.random.normal(keys[5], (dim,), jnp.float32),
        "pw_w": [],
        "pw_b": [],
    }
    for i in range(order - 1):
        params["pw_w"].append(
            0.1 * jax.random.normal(keys[6 + 2 * i], (dims[i], dims[i + 1]), jnp.float32))
        params["pw_b"].append(
            0.1 * jax.random.normal(keys[7 + 2 * i], (dims[i + 1],), jnp.float32))
    return params


def gnconv_forward(x_nchw, params, order=3, scale=1.0,
                   compute_dtype=jnp.float32, tm=None):
    N, C, H, W = x_nchw.shape
    dims = params["dims"]
    d0, sd = dims[0], sum(dims)
    M = N * H * W
    cd = compute_dtype
    itemsize = jnp.dtype(cd).itemsize

    if tm is None:
        # Rough per-row VMEM footprint (double-buffered streams + f32 working set).
        gate_row = 2 * (d0 + sd + C) * itemsize + 3 * sd * 4
        proj_row = 2 * (C + d0 + sd) * itemsize + (d0 + sd) * 4
        tm = _pick_tile(M, max(gate_row, proj_row))

    # TODO(synk): fold the NCHW<->NHWC boundary transposes into proj_in/gate_chain
    # (per-image grid + in-VMEM transpose) to drop two full HBM passes.
    x2d = jnp.transpose(x_nchw, (0, 2, 3, 1)).reshape(M, C).astype(cd)

    # proj_in: one wide dot; split into pwa / abc inside the kernel.
    w_in = params["proj_in_w"].astype(cd)
    b_in = params["proj_in_b"].astype(jnp.float32)
    pwa, abc = proj_in_conv(x2d, w_in, b_in, d0, tm=tm)

    # depthwise 7x7; `scale` folded into weights/bias on host (free).
    dw_w = (params["dw_w"] * scale).astype(jnp.float32)
    dw_b = (params["dw_b"] * scale).astype(jnp.float32)
    dw = depthwise_conv(abc.reshape(N, H, W, sd), dw_w, dw_b)
    dw2d = dw.reshape(M, sd)                      # contiguous reshape (no HBM pass)

    # fused gating chain + proj_out (single pallas_call over M tiles).
    pw_ws = [w.astype(cd) for w in params["pw_w"]]
    pw_bs = [b.astype(jnp.float32) for b in params["pw_b"]]
    w_out = params["proj_out_w"].astype(cd)
    b_out = params["proj_out_b"].astype(jnp.float32)

    extra_buf = 3 * tm * (d0 + sd + C) * itemsize
    deep_buffer = extra_buf <= _TILE_VMEM_BUDGET
    y2d = gate_chain(pwa, dw2d, pw_ws, pw_bs, w_out, b_out, dims, tm, deep_buffer)

    y = y2d.reshape(N, H, W, C).astype(x_nchw.dtype)
    return jnp.transpose(y, (0, 3, 1, 2))                               # NHWC->NCHW


# ----------------------------------------------------------------------------
# Pure-JAX reference for verification
# ----------------------------------------------------------------------------
def gnconv_ref(x_nchw, params, order=3, scale=1.0):
    N, C, H, W = x_nchw.shape
    dims = params["dims"]
    sd = sum(dims)
    x = jnp.transpose(x_nchw, (0, 2, 3, 1))

    fused = jnp.einsum("nhwc,cd->nhwd", x, params["proj_in_w"]) + params["proj_in_b"]
    pwa, abc = fused[..., :dims[0]], fused[..., dims[0]:]

    dw = jax.lax.conv_general_dilated(
        abc, params["dw_w"].reshape(7, 7, 1, sd),
        window_strides=(1, 1), padding="SAME",
        dimension_numbers=("NHWC", "HWIO", "NHWC"),
        feature_group_count=sd)
    dw = (dw + params["dw_b"]) * scale

    offs = np.cumsum([0] + dims)
    dw_list = [dw[..., offs[i]:offs[i + 1]] for i in range(order)]

    y = pwa * dw_list[0]
    for i in range(order - 1):
        y = jnp.einsum("nhwc,cd->nhwd", y, params["pw_w"][i]) + params["pw_b"][i]
        y = y * dw_list[i + 1]
    y = jnp.einsum("nhwc,cd->nhwd", y, params["proj_out_w"]) + params["proj_out_b"]
    return jnp.transpose(y, (0, 3, 1, 2))


if __name__ == "__main__":
    N, dim, H, W = 2, 8, 16, 16          # dims = [2, 4, 8], sum = 14, M = 512
    order, scale = 3, 1.0

    key = jax.random.PRNGKey(0)
    x = jax.random.normal(key, (N, dim, H, W), jnp.float32)
    params = init_gnconv_params(dim, order=order, seed=0)
    ref = gnconv_ref(x, params, order=order, scale=scale)

    # f32 path, auto tile (single-block grid here): exact check vs reference.
    out = gnconv_forward(x, params, order=order, scale=scale)
    out = jax.block_until_ready(out)
    assert out.shape == (N, dim, H, W)
    np.testing.assert_allclose(np.asarray(out), np.asarray(ref), atol=1e-4, rtol=1e-4)

    # f32 path with a forced small tile: exercises the multi-step grid and the
    # 3-deep pipelined streaming of the gate chain.
    out_tiled = gnconv_forward(x, params, order=order, scale=scale, tm=128)
    out_tiled = jax.block_until_ready(out_tiled)
    np.testing.assert_allclose(np.asarray(out_tiled), np.asarray(ref),
                               atol=1e-4, rtol=1e-4)

    # bf16 streaming path (halves HBM traffic on the mem-bound chain, bf16 MXU
    # dots with f32 accumulation).
    out_bf16 = gnconv_forward(x, params, order=order, scale=scale,
                              compute_dtype=jnp.bfloat16)
    out_bf16 = jax.block_until_ready(out_bf16)
    np.testing.assert_allclose(np.asarray(out_bf16), np.asarray(ref),
                               atol=4e-2, rtol=4e-2)

    print("KERNEL_OK")
</pallas_src>

<mosaic_0001>
module attributes {stable_mosaic.version = 11 : i64} {
  func.func @_proj_in_kernel(%arg0: i32, %arg1: memref<512x8xf32, #tpu.memory_space<vmem>>, %arg2: memref<8x16xf32, #tpu.memory_space<vmem>>, %arg3: memref<1x16xf32, #tpu.memory_space<vmem>>, %arg4: memref<512x2xf32, #tpu.memory_space<vmem>>, %arg5: memref<512x14xf32, #tpu.memory_space<vmem>>) attributes {dimension_semantics = [#tpu.dimension_semantics<parallel>], iteration_bounds = array<i64: 1>, scalar_prefetch = 0 : i64, scratch_operands = 0 : i64, tpu.core_type = #tpu.core_type<tc>, window_params = [{transform_indices = @transform_0, window_bounds = array<i64: 512, 8>}, {pipeline_mode = #tpu.pipeline_mode<synchronous>, transform_indices = @transform_1, window_bounds = array<i64: 8, 16>}, {pipeline_mode = #tpu.pipeline_mode<synchronous>, transform_indices = @transform_2, window_bounds = array<i64: 1, 16>}, {transform_indices = @transform_3, window_bounds = array<i64: 512, 2>}, {transform_indices = @transform_4, window_bounds = array<i64: 512, 14>}]} {
    %c0 = arith.constant 0 : index
    %c0_0 = arith.constant 0 : index
    %0 = vector.load %arg1[%c0, %c0_0] : memref<512x8xf32, #tpu.memory_space<vmem>>, vector<512x8xf32>
    %c0_1 = arith.constant 0 : index
    %c0_2 = arith.constant 0 : index
    %1 = vector.load %arg2[%c0_1, %c0_2] : memref<8x16xf32, #tpu.memory_space<vmem>>, vector<8x16xf32>
    %cst = arith.constant dense<0.000000e+00> : vector<512x16xf32>
    %2 = tpu.matmul %0, %1, %cst {dimension_numbers = #tpu.dot_dimension_numbers<[1], [0], [0], [1], [0, 0, 1, 1], [], []>} : vector<512x8xf32>, vector<8x16xf32>, vector<512x16xf32> -> vector<512x16xf32>
    %c0_3 = arith.constant 0 : index
    %c0_4 = arith.constant 0 : index
    %3 = vector.load %arg3[%c0_3, %c0_4] : memref<1x16xf32, #tpu.memory_space<vmem>>, vector<1x16xf32>
    %4 = vector.broadcast %3 : vector<1x16xf32> to vector<512x16xf32>
    %5 = arith.addf %2, %4 : vector<512x16xf32>
    %6 = vector.extract_strided_slice %5 {offsets = [0, 0], sizes = [512, 2], strides = [1, 1]} : vector<512x16xf32> to vector<512x2xf32>
    %c0_5 = arith.constant 0 : index
    %c0_6 = arith.constant 0 : index
    %7 = vector.load %arg4[%c0_5, %c0_6] : memref<512x2xf32, #tpu.memory_space<vmem>>, vector<512x2xf32>
    tpu.vector_store %arg4[%c0_5, %c0_6], %6 {strides = array<i32>} : memref<512x2xf32, #tpu.memory_space<vmem>>, vector<512x2xf32>,
    %8 = vector.extract_strided_slice %5 {offsets = [0, 2], sizes = [512, 14], strides = [1, 1]} : vector<512x16xf32> to vector<512x14xf32>
    %c0_7 = arith.constant 0 : index
    %c0_8 = arith.constant 0 : index
    %9 = vector.load %arg5[%c0_7, %c0_8] : memref<512x14xf32, #tpu.memory_space<vmem>>, vector<512x14xf32>
    tpu.vector_store %arg5[%c0_7, %c0_8], %8 {strides = array<i32>} : memref<512x14xf32, #tpu.memory_space<vmem>>, vector<512x14xf32>,
    return
  }
  func.func @transform_0(%arg0: i32) -> (i32, i32) {
    %c0_i32 = arith.constant 0 : i32
    %c0_i32_0 = arith.constant 0 : i32
    return %arg0, %c0_i32 : i32, i32
  }
  func.func @transform_1(%arg0: i32) -> (i32, i32) {
    %c0_i32 = arith.constant 0 : i32
    %c0_i32_0 = arith.constant 0 : i32
    %c0_i32_1 = arith.constant 0 : i32
    return %c0_i32, %c0_i32_0 : i32, i32
  }
  func.func @transform_2(%arg0: i32) -> (i32, i32) {
    %c0_i32 = arith.constant 0 : i32
    %c0_i32_0 = arith.constant 0 : i32
    %c0_i32_1 = arith.constant 0 : i32
    return %c0_i32, %c0_i32_0 : i32, i32
  }
  func.func @transform_3(%arg0: i32) -> (i32, i32) {
    %c0_i32 = arith.constant 0 : i32
    %c0_i32_0 = arith.constant 0 : i32
    return %arg0, %c0_i32 : i32, i32
  }
  func.func @transform_4(%arg0: i32) -> (i32, i32) {
    %c0_i32 = arith.constant 0 : i32
    %c0_i32_0 = arith.constant 0 : i32
    return %arg0, %c0_i32 : i32, i32
  }
}

</mosaic_0001>

<bundles_post_ra>
// kernel: tpu_custom_call.1
= control target key start
LH: loop header
LB: loop body
LE: loop exit
PB: predicated region body
PF: predicated region fallthrough
CT: control target
= control target key end

     0   :  { %vm88_vm0 = vcmask 64512   ;;  %vm666_vm1 = vcmask 15360   ;;  %s1291_s14 = smov 126   ;;  %vm987_vm2 = vcmask 113664   ;;  %s2357_s1 = inlined_call_operand.vmem [shape: f32[8,16], index: 1, kind: input, shape index: {}]   ;;  %s2358_s0 = inlined_call_operand.vmem [shape: f32[512,8], index: 0, kind: input, shape index: {}]   ;;  %s2359_s2 = inlined_call_operand.vmem [shape: f32[1,16], index: 2, kind: input, shape index: {}]   ;;  %s2360_s3 = inlined_call_operand.vmem [shape: f32[512,2], index: 3, kind: output, shape index: {0}]   ;;  %s2361_s4 = inlined_call_operand.vmem [shape: f32[512,14], index: 4, kind: output, shape index: {1}]  }
   0x1   :  { %v80_v0 = vld [vmem:[%s2357_s1] sm:$0xff]  ;;  %v17_v3 = vld [vmem:[%s2358_s0 + $0x8] sm:$0xff]  ;;  %v18_v5 = vld [vmem:[%s2358_s0 + $0x10] sm:$0xff] }
   0x2   :  { %v16_v1 = vld [vmem:[%s2358_s0] sm:$0xff]  ;;  %1190 = vmatprep.subr.mxu0 %v80_v0  ;;  %1288 = vmatprep.subr.mxu1 %v80_v0  ;;  %v49_v4 = vld [vmem:[%s2358_s0 + $0x108] sm:$0xff]  ;;  %v50_v6 = vld [vmem:[%s2358_s0 + $0x110] sm:$0xff] }
   0x3   :  { %v48_v2 = vld [vmem:[%s2358_s0 + $0x100] sm:$0xff]  ;;  %1191 = vmatpush3.msra.mxu0 %v80_v0  ;;  %1289 = vmatpush3.msra.mxu1 %v80_v0  ;;  %v19_v7 = vld [vmem:[%s2358_s0 + $0x18] sm:$0xff]  ;;  %v21_v11 = vld [vmem:[%s2358_s0 + $0x28] sm:$0xff] }
   0x4   :  { %1192 = vmatprep.mubr.msk.f32.mxu0 %vm88_vm0, %v16_v1  ;;  %1240 = vmatprep.mubr.msk.f32.mxu1 %vm88_vm0, %v48_v2  ;;  %v51_v8 = vld [vmem:[%s2358_s0 + $0x118] sm:$0xff]  ;;  %v20_v9 = vld [vmem:[%s2358_s0 + $0x20] sm:$0xff]  ;;  %v53_v12 = vld [vmem:[%s2358_s0 + $0x128] sm:$0xff] }
   0x5   :  { %1193 = vmatmul.mubr.msk.f32.vlgmr.msra.gmra.mrb[0].mxu0 %vm88_vm0, %v17_v3  ;;  %1241 = vmatmul.mubr.msk.f32.vlgmr.msra.gmra.mrb[0].mxu1 %vm88_vm0, %v49_v4  ;;  %v52_v10 = vld [vmem:[%s2358_s0 + $0x120] sm:$0xff]  ;;  %v22_v13 = vld [vmem:[%s2358_s0 + $0x30] sm:$0xff]  ;;  %v23_v15 = vld [vmem:[%s2358_s0 + $0x38] sm:$0xff] }
   0x6   :  { %1195 = vmatprep.mubr.msk.f32.mxu0 %vm88_vm0, %v18_v5  ;;  %1243 = vmatprep.mubr.msk.f32.mxu1 %vm88_vm0, %v50_v6  ;;  %v54_v14 = vld [vmem:[%s2358_s0 + $0x130] sm:$0xff]  ;;  %v55_v16 = vld [vmem:[%s2358_s0 + $0x138] sm:$0xff]  ;;  %v24_v17 = vld [vmem:[%s2358_s0 + $0x40] sm:$0xff] }
   0x7   :  { %v56_v18 = vld [vmem:[%s2358_s0 + $0x140] sm:$0xff]  ;;  %v25_v19 = vld [vmem:[%s2358_s0 + $0x48] sm:$0xff]  ;;  %v26_v21 = vld [vmem:[%s2358_s0 + $0x50] sm:$0xff] }
   0x8   :  { %v57_v20 = vld [vmem:[%s2358_s0 + $0x148] sm:$0xff]  ;;  %v58_v22 = vld [vmem:[%s2358_s0 + $0x150] sm:$0xff]  ;;  %v27_v23 = vld [vmem:[%s2358_s0 + $0x58] sm:$0xff] }
   0x9   :  { %1196 = vmatmul.mubr.msk.f32.gmra.mrb[2].mxu0 %vm88_vm0, %v19_v7  ;;  %1244 = vmatmul.mubr.msk.f32.gmra.mrb[2].mxu1 %vm88_vm0, %v51_v8  ;;  %v59_v24 = vld [vmem:[%s2358_s0 + $0x158] sm:$0xff]  ;;  %v28_v25 = vld [vmem:[%s2358_s0 + $0x60] sm:$0xff]  ;;  %v29_v27 = vld [vmem:[%s2358_s0 + $0x68] sm:$0xff] }
   0xa   :  { %1198 = vmatprep.mubr.msk.f32.mxu0 %vm88_vm0, %v20_v9  ;;  %1246 = vmatprep.mubr.msk.f32.mxu1 %vm88_vm0, %v52_v10  ;;  %v60_v26 = vld [vmem:[%s2358_s0 + $0x160] sm:$0xff]  ;;  %v61_v28 = vld [vmem:[%s2358_s0 + $0x168] sm:$0xff]  ;;  %v30_v29 = vld [vmem:[%s2358_s0 + $0x70] sm:$0xff] }
   0xb   :  { %v62_v30 = vld [vmem:[%s2358_s0 + $0x170] sm:$0xff]  ;;  %v31_v31 = vld [vmem:[%s2358_s0 + $0x78] sm:$0xff]  ;;  %v32_v33 = vld [vmem:[%s2358_s0 + $0x80] sm:$0xff] }
   0xc   :  { %v63_v32 = vld [vmem:[%s2358_s0 + $0x178] sm:$0xff]  ;;  %v64_v34 = vld [vmem:[%s2358_s0 + $0x180] sm:$0xff]  ;;  %v33_v35 = vld [vmem:[%s2358_s0 + $0x88] sm:$0xff] }
   0xd   :  { %1199 = vmatmul.mubr.msk.f32.gmra.mrb[4].mxu0 %vm88_vm0, %v21_v11  ;;  %1247 = vmatmul.mubr.msk.f32.gmra.mrb[4].mxu1 %vm88_vm0, %v53_v12  ;;  %v65_v36 = vld [vmem:[%s2358_s0 + $0x188] sm:$0xff]  ;;  %v34_v37 = vld [vmem:[%s2358_s0 + $0x90] sm:$0xff]  ;;  %v35_v39 = vld [vmem:[%s2358_s0 + $0x98] sm:$0xff] }
   0xe   :  { %1201 = vmatprep.mubr.msk.f32.mxu0 %vm88_vm0, %v22_v13  ;;  %1249 = vmatprep.mubr.msk.f32.mxu1 %vm88_vm0, %v54_v14  ;;  %v66_v38 = vld [vmem:[%s2358_s0 + $0x190] sm:$0xff]  ;;  %v67_v40 = vld [vmem:[%s2358_s0 + $0x198] sm:$0xff]  ;;  %v36_v41 = vld [vmem:[%s2358_s0 + $0xa0] sm:$0xff] }
   0xf   :  { %v68_v42 = vld [vmem:[%s2358_s0 + $0x1a0] sm:$0xff]  ;;  %v37_v43 = vld [vmem:[%s2358_s0 + $0xa8] sm:$0xff]  ;;  %v38_v45 = vld [vmem:[%s2358_s0 + $0xb0] sm:$0xff] }
  0x10   :  { %v69_v44 = vld [vmem:[%s2358_s0 + $0x1a8] sm:$0xff]  ;;  %v70_v46 = vld [vmem:[%s2358_s0 + $0x1b0] sm:$0xff]  ;;  %v39_v47 = vld [vmem:[%s2358_s0 + $0xb8] sm:$0xff] }
  0x11   :  { %1202 = vmatmul.mubr.msk.f32.gmra.mrb[6].mxu0 %vm88_vm0, %v23_v15  ;;  %1250 = vmatmul.mubr.msk.f32.gmra.mrb[6].mxu1 %vm88_vm0, %v55_v16  ;;  %v71_v48 = vld [vmem:[%s2358_s0 + $0x1b8] sm:$0xff]  ;;  %v40_v49 = vld [vmem:[%s2358_s0 + $0xc0] sm:$0xff]  ;;  %v41_v51 = vld [vmem:[%s2358_s0 + $0xc8] sm:$0xff] }
  0x12   :  { %1204 = vmatprep.mubr.msk.f32.mxu0 %vm88_vm0, %v24_v17  ;;  %1252 = vmatprep.mubr.msk.f32.mxu1 %vm88_vm0, %v56_v18  ;;  %v72_v50 = vld [vmem:[%s2358_s0 + $0x1c0] sm:$0xff]  ;;  %v73_v52 = vld [vmem:[%s2358_s0 + $0x1c8] sm:$0xff]  ;;  %v42_v53 = vld [vmem:[%s2358_s0 + $0xd0] sm:$0xff] }
  0x13   :  { %v74_v54 = vld [vmem:[%s2358_s0 + $0x1d0] sm:$0xff]  ;;  %v43_v55 = vld [vmem:[%s2358_s0 + $0xd8] sm:$0xff]  ;;  %v44_v57 = vld [vmem:[%s2358_s0 + $0xe0] sm:$0xff] }
  0x14   :  { %v75_v56 = vld [vmem:[%s2358_s0 + $0x1d8] sm:$0xff]  ;;  %v76_v58 = vld [vmem:[%s2358_s0 + $0x1e0] sm:$0xff]  ;;  %v45_v59 = vld [vmem:[%s2358_s0 + $0xe8] sm:$0xff] }
  0x15   :  { %1205 = vmatmul.mubr.msk.f32.gmra.mrb[8].mxu0 %vm88_vm0, %v25_v19  ;;  %1253 = vmatmul.mubr.msk.f32.gmra.mrb[8].mxu1 %vm88_vm0, %v57_v20  ;;  %v77_v60 = vld [vmem:[%s2358_s0 + $0x1e8] sm:$0xff]  ;;  %v46_v61 = vld [vmem:[%s2358_s0 + $0xf0] sm:$0xff]  ;;  %v47_v63 = vld [vmem:[%s2358_s0 + $0xf8] sm:$0xff] }
  0x16   :  { %1207 = vmatprep.mubr.msk.f32.mxu0 %vm88_vm0, %v26_v21  ;;  %1255 = vmatprep.mubr.msk.f32.mxu1 %vm88_vm0, %v58_v22  ;;  %v78_v62 = vld [vmem:[%s2358_s0 + $0x1f0] sm:$0xff]  ;;  %v79_v0 = vld [vmem:[%s2358_s0 + $0x1f8] sm:$0xff]  ;;  %v1579_v1 = vld [vmem:[%s2359_s2] ss:$0 sm:$0xff] }
  0x19   :  { %1208 = vmatmul.mubr.msk.f32.gmra.mrb[10].mxu0 %vm88_vm0, %v27_v23  ;;  %1256 = vmatmul.mubr.msk.f32.gmra.mrb[10].mxu1 %vm88_vm0, %v59_v24 }
  0x1a   :  { %1210 = vmatprep.mubr.msk.f32.mxu0 %vm88_vm0, %v28_v25  ;;  %1258 = vmatprep.mubr.msk.f32.mxu1 %vm88_vm0, %v60_v26 }
  0x1d   :  { %1211 = vmatmul.mubr.msk.f32.gmra.mrb[12].mxu0 %vm88_vm0, %v29_v27  ;;  %1259 = vmatmul.mubr.msk.f32.gmra.mrb[12].mxu1 %vm88_vm0, %v61_v28 }
  0x1e   :  { %1213 = vmatprep.mubr.msk.f32.mxu0 %vm88_vm0, %v30_v29  ;;  %1261 = vmatprep.mubr.msk.f32.mxu1 %vm88_vm0, %v62_v30 }
  0x21   :  { %1214 = vmatmul.mubr.msk.f32.gmra.mrb[14].mxu0 %vm88_vm0, %v31_v31  ;;  %1262 = vmatmul.mubr.msk.f32.gmra.mrb[14].mxu1 %vm88_vm0, %v63_v32 }
  0x22   :  { %1216 = vmatprep.mubr.msk.f32.mxu0 %vm88_vm0, %v32_v33  ;;  %1264 = vmatprep.mubr.msk.f32.mxu1 %vm88_vm0, %v64_v34 }
  0x25   :  { %1217 = vmatmul.mubr.msk.f32.gmra.mrb[16].mxu0 %vm88_vm0, %v33_v35  ;;  %1265 = vmatmul.mubr.msk.f32.gmra.mrb[16].mxu1 %vm88_vm0, %v65_v36 }
  0x26   :  { %1219 = vmatprep.mubr.msk.f32.mxu0 %vm88_vm0, %v34_v37  ;;  %1267 = vmatprep.mubr.msk.f32.mxu1 %vm88_vm0, %v66_v38 }
  0x29   :  { %1220 = vmatmul.mubr.msk.f32.gmra.mrb[18].mxu0 %vm88_vm0, %v35_v39  ;;  %1268 = vmatmul.mubr.msk.f32.gmra.mrb[18].mxu1 %vm88_vm0, %v67_v40 }
  0x2a   :  { %1222 = vmatprep.mubr.msk.f32.mxu0 %vm88_vm0, %v36_v41  ;;  %1270 = vmatprep.mubr.msk.f32.mxu1 %vm88_vm0, %v68_v42 }
  0x2d   :  { %1223 = vmatmul.mubr.msk.f32.gmra.mrb[20].mxu0 %vm88_vm0, %v37_v43  ;;  %1271 = vmatmul.mubr.msk.f32.gmra.mrb[20].mxu1 %vm88_vm0, %v69_v44 }
  0x2e   :  { %1225 = vmatprep.mubr.msk.f32.mxu0 %vm88_vm0, %v38_v45  ;;  %1273 = vmatprep.mubr.msk.f32.mxu1 %vm88_vm0, %v70_v46 }
  0x31   :  { %1226 = vmatmul.mubr.msk.f32.gmra.mrb[22].mxu0 %vm88_vm0, %v39_v47  ;;  %1274 = vmatmul.mubr.msk.f32.gmra.mrb[22].mxu1 %vm88_vm0, %v71_v48 }
  0x32   :  { %1228 = vmatprep.mubr.msk.f32.mxu0 %vm88_vm0, %v40_v49  ;;  %1276 = vmatprep.mubr.msk.f32.mxu1 %vm88_vm0, %v72_v50 }
  0x35   :  { %1229 = vmatmul.mubr.msk.f32.gmra.mrb[24].mxu0 %vm88_vm0, %v41_v51  ;;  %1277 = vmatmul.mubr.msk.f32.gmra.mrb[24].mxu1 %vm88_vm0, %v73_v52 }
  0x36   :  { %1231 = vmatprep.mubr.msk.f32.mxu0 %vm88_vm0, %v42_v53  ;;  %1279 = vmatprep.mubr.msk.f32.mxu1 %vm88_vm0, %v74_v54 }
  0x39   :  { %1232 = vmatmul.mubr.msk.f32.gmra.mrb[26].mxu0 %vm88_vm0, %v43_v55  ;;  %1280 = vmatmul.mubr.msk.f32.gmra.mrb[26].mxu1 %vm88_vm0, %v75_v56 }
  0x3a   :  { %1234 = vmatprep.mubr.msk.f32.mxu0 %vm88_vm0, %v44_v57  ;;  %1282 = vmatprep.mubr.msk.f32.mxu1 %vm88_vm0, %v76_v58 }
  0x3d   :  { %1235 = vmatmul.mubr.msk.f32.gmra.mrb[28].mxu0 %vm88_vm0, %v45_v59  ;;  %1283 = vmatmul.mubr.msk.f32.gmra.mrb[28].mxu1 %vm88_vm0, %v77_v60 }
  0x3e   :  { %1237 = vmatprep.mubr.msk.f32.mxu0 %vm88_vm0, %v46_v61  ;;  %1285 = vmatprep.mubr.msk.f32.mxu1 %vm88_vm0, %v78_v62 }
  0x41   :  { %1238 = vmatmul.mubr.msk.f32.gmra.mrb[30].mxu0 %vm88_vm0, %v47_v63  ;;  %1286 = vmatmul.mubr.msk.f32.gmra.mrb[30].mxu1 %vm88_vm0, %v79_v0 }
  0xd8   :  { %v1194_v2 = vpop.f32.mrb[0].mxu0  ;;  %v1242_v3 = vpop.f32.mrb[0].mxu1 }
  0xd9   :  { %v353_v4 = vadd.f32 %v1194_v2, %v1579_v1  ;;  %v513_v5 = vadd.f32 %v1242_v3, %v1579_v1  ;;  %v347_v6 = vpop.f32.mrb[1].mxu0  ;;  %v507_v7 = vpop.f32.mrb[1].mxu1 }
  0xda   :  { %v348_v8 = vadd.f32 %v1579_v1, %v347_v6  ;;  %v508_v9 = vadd.f32 %v1579_v1, %v507_v7 }
  0xdb   :  { %668 = vst.msk [vmem:[%s2360_s3 + $0x8] sm:$0xff] %vm666_vm1, %v353_v4  ;;  %700 = vst.msk [vmem:[%s2360_s3 + $0x108] sm:$0xff] %vm666_vm1, %v513_v5  ;;  %861 = vrot.lane.b32.xlu1 %v513_v5, %s1291_s14  ;;  %797 = vrot.lane.b32.xlu0 %v353_v4, %s1291_s14 }
  0xdc   :  { %667 = vst.msk [vmem:[%s2360_s3] sm:$0xff] %vm666_vm1, %v348_v8  ;;  %699 = vst.msk [vmem:[%s2360_s3 + $0x100] sm:$0xff] %vm666_vm1, %v508_v9  ;;  %v1197_v10 = vpop.f32.mrb[2].mxu0  ;;  %v1245_v11 = vpop.f32.mrb[2].mxu1 }
  0xdd   :  { %v363_v12 = vadd.f32 %v1197_v10, %v1579_v1  ;;  %v357_v13 = vpop.f32.mrb[3].mxu0  ;;  %v523_v14 = vadd.f32 %v1245_v11, %v1579_v1  ;;  %v517_v15 = vpop.f32.mrb[3].mxu1 }
  0xde   :  { %v358_v16 = vadd.f32 %v1579_v1, %v357_v13  ;;  %v518_v17 = vadd.f32 %v1579_v1, %v517_v15 }
  0xdf   :  { %670 = vst.msk [vmem:[%s2360_s3 + $0x18] sm:$0xff] %vm666_vm1, %v363_v12  ;;  %702 = vst.msk [vmem:[%s2360_s3 + $0x118] sm:$0xff] %vm666_vm1, %v523_v14  ;;  %801 = vrot.lane.b32.xlu1 %v363_v12, %s1291_s14  ;;  %795 = vrot.lane.b32.xlu0 %v348_v8, %s1291_s14 }
  0xe0   :  { %669 = vst.msk [vmem:[%s2360_s3 + $0x10] sm:$0xff] %vm666_vm1, %v358_v16  ;;  %701 = vst.msk [vmem:[%s2360_s3 + $0x110] sm:$0xff] %vm666_vm1, %v518_v17  ;;  %v1200_v18 = vpop.f32.mrb[4].mxu0  ;;  %v1248_v19 = vpop.f32.mrb[4].mxu1 }
  0xe1   :  { %v373_v20 = vadd.f32 %v1200_v18, %v1579_v1  ;;  %v367_v21 = vpop.f32.mrb[5].mxu0  ;;  %v533_v22 = vadd.f32 %v1248_v19, %v1579_v1  ;;  %v527_v23 = vpop.f32.mrb[5].mxu1 }
  0xe2   :  { %v368_v24 = vadd.f32 %v1579_v1, %v367_v21  ;;  %v528_v25 = vadd.f32 %v1579_v1, %v527_v23 }
  0xe3   :  { %865 = vrot.lane.b32.xlu1 %v523_v14, %s1291_s14  ;;  %859 = vrot.lane.b32.xlu0 %v508_v9, %s1291_s14  ;;  %672 = vst.msk [vmem:[%s2360_s3 + $0x28] sm:$0xff] %vm666_vm1, %v373_v20  ;;  %704 = vst.msk [vmem:[%s2360_s3 + $0x128] sm:$0xff] %vm666_vm1, %v533_v22 }
  0xe4   :  { %671 = vst.msk [vmem:[%s2360_s3 + $0x20] sm:$0xff] %vm666_vm1, %v368_v24  ;;  %703 = vst.msk [vmem:[%s2360_s3 + $0x120] sm:$0xff] %vm666_vm1, %v528_v25  ;;  %v1203_v26 = vpop.f32.mrb[6].mxu0  ;;  %v1251_v27 = vpop.f32.mrb[6].mxu1 }
  0xe5   :  { %v383_v28 = vadd.f32 %v1203_v26, %v1579_v1  ;;  %v377_v29 = vpop.f32.mrb[7].mxu0  ;;  %v543_v30 = vadd.f32 %v1251_v27, %v1579_v1  ;;  %v537_v31 = vpop.f32.mrb[7].mxu1 }
  0xe6   :  { %v378_v32 = vadd.f32 %v1579_v1, %v377_v29  ;;  %v538_v33 = vadd.f32 %v1579_v1, %v537_v31 }
  0xe7   :  { %799 = vrot.lane.b32.xlu1 %v358_v16, %s1291_s14  ;;  %863 = vrot.lane.b32.xlu0 %v518_v17, %s1291_s14  ;;  %674 = vst.msk [vmem:[%s2360_s3 + $0x38] sm:$0xff] %vm666_vm1, %v383_v28  ;;  %706 = vst.msk [vmem:[%s2360_s3 + $0x138] sm:$0xff] %vm666_vm1, %v543_v30 }
  0xe8   :  { %673 = vst.msk [vmem:[%s2360_s3 + $0x30] sm:$0xff] %vm666_vm1, %v378_v32  ;;  %705 = vst.msk [vmem:[%s2360_s3 + $0x130] sm:$0xff] %vm666_vm1, %v538_v33  ;;  %v1206_v34 = vpop.f32.mrb[8].mxu0  ;;  %v1254_v35 = vpop.f32.mrb[8].mxu1 }
  0xe9   :  { %v393_v36 = vadd.f32 %v1206_v34, %v1579_v1  ;;  %v387_v37 = vpop.f32.mrb[9].mxu0  ;;  %v1671_v38 = vadd.f32 %v1254_v35, %v1579_v1  ;;  %v547_v39 = vpop.f32.mrb[9].mxu1 }
  0xea   :  { %v388_v40 = vadd.f32 %v1579_v1, %v387_v37  ;;  %v1675_v41 = vadd.f32 %v1579_v1, %v547_v39 }
  0xeb   :  { %805 = vrot.lane.b32.xlu1 %v373_v20, %s1291_s14  ;;  %803 = vrot.lane.b32.xlu0 %v368_v24, %s1291_s14  ;;  %676 = vst.msk [vmem:[%s2360_s3 + $0x48] sm:$0xff] %vm666_vm1, %v393_v36  ;;  %708 = vst.msk [vmem:[%s2360_s3 + $0x148] sm:$0xff] %vm666_vm1, %v1671_v38 }
  0xec   :  { %675 = vst.msk [vmem:[%s2360_s3 + $0x40] sm:$0xff] %vm666_vm1, %v388_v40  ;;  %707 = vst.msk [vmem:[%s2360_s3 + $0x140] sm:$0xff] %vm666_vm1, %v1675_v41  ;;  %v1209_v42 = vpop.f32.mrb[10].mxu0  ;;  %v1257_v43 = vpop.f32.mrb[10].mxu1 }
  0xed   :  { %v1698_v44 = vadd.f32 %v1209_v42, %v1579_v1  ;;  %v397_v45 = vpop.f32.mrb[11].mxu0  ;;  %v1701_v46 = vadd.f32 %v1257_v43, %v1579_v1  ;;  %v557_v47 = vpop.f32.mrb[11].mxu1 }
  0xee   :  { %v1704_v48 = vadd.f32 %v1579_v1, %v397_v45  ;;  %v1707_v49 = vadd.f32 %v1579_v1, %v557_v47 }
  0xef   :  { %869 = vrot.lane.b32.xlu1 %v533_v22, %s1291_s14  ;;  %867 = vrot.lane.b32.xlu0 %v528_v25, %s1291_s14  ;;  %678 = vst.msk [vmem:[%s2360_s3 + $0x58] sm:$0xff] %vm666_vm1, %v1698_v44  ;;  %710 = vst.msk [vmem:[%s2360_s3 + $0x158] sm:$0xff] %vm666_vm1, %v1701_v46 }
  0xf0   :  { %677 = vst.msk [vmem:[%s2360_s3 + $0x50] sm:$0xff] %vm666_vm1, %v1704_v48  ;;  %709 = vst.msk [vmem:[%s2360_s3 + $0x150] sm:$0xff] %vm666_vm1, %v1707_v49  ;;  %v1212_v50 = vpop.f32.mrb[12].mxu0  ;;  %v1260_v51 = vpop.f32.mrb[12].mxu1 }
  0xf1   :  { %v1732_v52 = vadd.f32 %v1212_v50, %v1579_v1  ;;  %v407_v53 = vpop.f32.mrb[13].mxu0  ;;  %v1735_v54 = vadd.f32 %v1260_v51, %v1579_v1  ;;  %v567_v55 = vpop.f32.mrb[13].mxu1 }
  0xf2   :  { %v1738_v56 = vadd.f32 %v1579_v1, %v407_v53  ;;  %v1741_v57 = vadd.f32 %v1579_v1, %v567_v55 }
  0xf3   :  { %809 = vrot.lane.b32.xlu1 %v383_v28, %s1291_s14  ;;  %807 = vrot.lane.b32.xlu0 %v378_v32, %s1291_s14  ;;  %680 = vst.msk [vmem:[%s2360_s3 + $0x68] sm:$0xff] %vm666_vm1, %v1732_v52  ;;  %712 = vst.msk [vmem:[%s2360_s3 + $0x168] sm:$0xff] %vm666_vm1, %v1735_v54 }
  0xf4   :  { %679 = vst.msk [vmem:[%s2360_s3 + $0x60] sm:$0xff] %vm666_vm1, %v1738_v56  ;;  %711 = vst.msk [vmem:[%s2360_s3 + $0x160] sm:$0xff] %vm666_vm1, %v1741_v57  ;;  %v1215_v58 = vpop.f32.mrb[14].mxu0  ;;  %v1263_v59 = vpop.f32.mrb[14].mxu1 }
  0xf5   :  { %v1766_v60 = vadd.f32 %v1215_v58, %v1579_v1  ;;  %v417_v61 = vpop.f32.mrb[15].mxu0  ;;  %v1769_v62 = vadd.f32 %v1263_v59, %v1579_v1  ;;  %v577_v63 = vpop.f32.mrb[15].mxu1 }
  0xf6   :  { %v1772_v0 = vadd.f32 %v1579_v1, %v417_v61  ;;  %v1775_v2 = vadd.f32 %v1579_v1, %v577_v63 }
  0xf7   :  { %873 = vrot.lane.b32.xlu1 %v543_v30, %s1291_s14  ;;  %871 = vrot.lane.b32.xlu0 %v538_v33, %s1291_s14  ;;  %682 = vst.msk [vmem:[%s2360_s3 + $0x78] sm:$0xff] %vm666_vm1, %v1766_v60  ;;  %714 = vst.msk [vmem:[%s2360_s3 + $0x178] sm:$0xff] %vm666_vm1, %v1769_v62 }
  0xf8   :  { %681 = vst.msk [vmem:[%s2360_s3 + $0x70] sm:$0xff] %vm666_vm1, %v1772_v0  ;;  %713 = vst.msk [vmem:[%s2360_s3 + $0x170] sm:$0xff] %vm666_vm1, %v1775_v2  ;;  %v1218_v3 = vpop.f32.mrb[16].mxu0  ;;  %v1266_v4 = vpop.f32.mrb[16].mxu1 }
  0xf9   :  { %v1800_v5 = vadd.f32 %v1218_v3, %v1579_v1  ;;  %v427_v6 = vpop.f32.mrb[17].mxu0  ;;  %v1803_v7 = vadd.f32 %v1266_v4, %v1579_v1  ;;  %v587_v8 = vpop.f32.mrb[17].mxu1 }
  0xfa   :  { %v1806_v9 = vadd.f32 %v1579_v1, %v427_v6  ;;  %v1809_v10 = vadd.f32 %v1579_v1, %v587_v8 }
  0xfb   :  { %813 = vrot.lane.b32.xlu1 %v393_v36, %s1291_s14  ;;  %811 = vrot.lane.b32.xlu0 %v388_v40, %s1291_s14  ;;  %684 = vst.msk [vmem:[%s2360_s3 + $0x88] sm:$0xff] %vm666_vm1, %v1800_v5  ;;  %716 = vst.msk [vmem:[%s2360_s3 + $0x188] sm:$0xff] %vm666_vm1, %v1803_v7 }
  0xfc   :  { %683 = vst.msk [vmem:[%s2360_s3 + $0x80] sm:$0xff] %vm666_vm1, %v1806_v9  ;;  %715 = vst.msk [vmem:[%s2360_s3 + $0x180] sm:$0xff] %vm666_vm1, %v1809_v10  ;;  %v1221_v11 = vpop.f32.mrb[18].mxu0  ;;  %v1269_v12 = vpop.f32.mrb[18].mxu1 }
  0xfd   :  { %v1834_v13 = vadd.f32 %v1221_v11, %v1579_v1  ;;  %v437_v14 = vpop.f32.mrb[19].mxu0  ;;  %v1837_v15 = vadd.f32 %v1269_v12, %v1579_v1  ;;  %v597_v16 = vpop.f32.mrb[19].mxu1 }
  0xfe   :  { %v1840_v17 = vadd.f32 %v1579_v1, %v437_v14  ;;  %v1843_v18 = vadd.f32 %v1579_v1, %v597_v16 }
  0xff   :  { %877 = vrot.lane.b32.xlu1 %v1671_v38, %s1291_s14  ;;  %875 = vrot.lane.b32.xlu0 %v1675_v41, %s1291_s14  ;;  %686 = vst.msk [vmem:[%s2360_s3 + $0x98] sm:$0xff] %vm666_vm1, %v1834_v13  ;;  %718 = vst.msk [vmem:[%s2360_s3 + $0x198] sm:$0xff] %vm666_vm1, %v1837_v15 }
 0x100   :  { %685 = vst.msk [vmem:[%s2360_s3 + $0x90] sm:$0xff] %vm666_vm1, %v1840_v17  ;;  %717 = vst.msk [vmem:[%s2360_s3 + $0x190] sm:$0xff] %vm666_vm1, %v1843_v18  ;;  %v1224_v19 = vpop.f32.mrb[20].mxu0  ;;  %v1272_v20 = vpop.f32.mrb[20].mxu1 }
 0x101   :  { %v1870_v21 = vadd.f32 %v1224_v19, %v1579_v1  ;;  %v447_v22 = vpop.f32.mrb[21].mxu0  ;;  %v1873_v23 = vadd.f32 %v1272_v20, %v1579_v1  ;;  %v607_v24 = vpop.f32.mrb[21].mxu1 }
 0x102   :  { %v1876_v25 = vadd.f32 %v1579_v1, %v447_v22  ;;  %v1879_v26 = vadd.f32 %v1579_v1, %v607_v24 }
 0x103   :  { %817 = vrot.lane.b32.xlu1 %v1698_v44, %s1291_s14  ;;  %815 = vrot.lane.b32.xlu0 %v1704_v48, %s1291_s14  ;;  %688 = vst.msk [vmem:[%s2360_s3 + $0xa8] sm:$0xff] %vm666_vm1, %v1870_v21  ;;  %720 = vst.msk [vmem:[%s2360_s3 + $0x1a8] sm:$0xff] %vm666_vm1, %v1873_v23 }
 0x104   :  { %687 = vst.msk [vmem:[%s2360_s3 + $0xa0] sm:$0xff] %vm666_vm1, %v1876_v25  ;;  %719 = vst.msk [vmem:[%s2360_s3 + $0x1a0] sm:$0xff] %vm666_vm1, %v1879_v26  ;;  %v1227_v27 = vpop.f32.mrb[22].mxu0  ;;  %v1275_v28 = vpop.f32.mrb[22].mxu1 }
 0x105   :  { %v1906_v29 = vadd.f32 %v1227_v27, %v1579_v1  ;;  %v457_v30 = vpop.f32.mrb[23].mxu0  ;;  %v1909_v31 = vadd.f32 %v1275_v28, %v1579_v1  ;;  %v617_v32 = vpop.f32.mrb[23].mxu1 }
 0x106   :  { %v1912_v33 = vadd.f32 %v1579_v1, %v457_v30  ;;  %v1915_v34 = vadd.f32 %v1579_v1, %v617_v32 }
 0x107   :  { %881 = vrot.lane.b32.xlu1 %v1701_v46, %s1291_s14  ;;  %879 = vrot.lane.b32.xlu0 %v1707_v49, %s1291_s14  ;;  %690 = vst.msk [vmem:[%s2360_s3 + $0xb8] sm:$0xff] %vm666_vm1, %v1906_v29  ;;  %722 = vst.msk [vmem:[%s2360_s3 + $0x1b8] sm:$0xff] %vm666_vm1, %v1909_v31 }
 0x108   :  { %689 = vst.msk [vmem:[%s2360_s3 + $0xb0] sm:$0xff] %vm666_vm1, %v1912_v33  ;;  %721 = vst.msk [vmem:[%s2360_s3 + $0x1b0] sm:$0xff] %vm666_vm1, %v1915_v34  ;;  %v1230_v35 = vpop.f32.mrb[24].mxu0  ;;  %v1278_v36 = vpop.f32.mrb[24].mxu1 }
 0x109   :  { %v1942_v37 = vadd.f32 %v1230_v35, %v1579_v1  ;;  %v467_v38 = vpop.f32.mrb[25].mxu0  ;;  %v1945_v39 = vadd.f32 %v1278_v36, %v1579_v1  ;;  %v627_v40 = vpop.f32.mrb[25].mxu1 }
 0x10a   :  { %v1948_v41 = vadd.f32 %v1579_v1, %v467_v38  ;;  %v1951_v42 = vadd.f32 %v1579_v1, %v627_v40 }
 0x10b   :  { %821 = vrot.lane.b32.xlu1 %v1732_v52, %s1291_s14  ;;  %819 = vrot.lane.b32.xlu0 %v1738_v56, %s1291_s14  ;;  %692 = vst.msk [vmem:[%s2360_s3 + $0xc8] sm:$0xff] %vm666_vm1, %v1942_v37  ;;  %724 = vst.msk [vmem:[%s2360_s3 + $0x1c8] sm:$0xff] %vm666_vm1, %v1945_v39 }
 0x10c   :  { %691 = vst.msk [vmem:[%s2360_s3 + $0xc0] sm:$0xff] %vm666_vm1, %v1948_v41  ;;  %723 = vst.msk [vmem:[%s2360_s3 + $0x1c0] sm:$0xff] %vm666_vm1, %v1951_v42  ;;  %v1233_v43 = vpop.f32.mrb[26].mxu0  ;;  %v1281_v44 = vpop.f32.mrb[26].mxu1 }
 0x10d   :  { %v483_v45 = vadd.f32 %v1233_v43, %v1579_v1  ;;  %v477_v46 = vpop.f32.mrb[27].mxu0  ;;  %v643_v47 = vadd.f32 %v1281_v44, %v1579_v1  ;;  %v637_v48 = vpop.f32.mrb[27].mxu1 }
 0x10e   :  { %v478_v49 = vadd.f32 %v1579_v1, %v477_v46  ;;  %v638_v50 = vadd.f32 %v1579_v1, %v637_v48 }
 0x10f   :  { %885 = vrot.lane.b32.xlu1 %v1735_v54, %s1291_s14  ;;  %883 = vrot.lane.b32.xlu0 %v1741_v57, %s1291_s14  ;;  %694 = vst.msk [vmem:[%s2360_s3 + $0xd8] sm:$0xff] %vm666_vm1, %v483_v45  ;;  %726 = vst.msk [vmem:[%s2360_s3 + $0x1d8] sm:$0xff] %vm666_vm1, %v643_v47 }
 0x110   :  { %693 = vst.msk [vmem:[%s2360_s3 + $0xd0] sm:$0xff] %vm666_vm1, %v478_v49  ;;  %725 = vst.msk [vmem:[%s2360_s3 + $0x1d0] sm:$0xff] %vm666_vm1, %v638_v50  ;;  %v1236_v51 = vpop.f32.mrb[28].mxu0  ;;  %v1284_v52 = vpop.f32.mrb[28].mxu1 }
 0x111   :  { %v493_v53 = vadd.f32 %v1236_v51, %v1579_v1  ;;  %v487_v54 = vpop.f32.mrb[29].mxu0  ;;  %v653_v55 = vadd.f32 %v1284_v52, %v1579_v1  ;;  %v647_v56 = vpop.f32.mrb[29].mxu1 }
 0x112   :  { %v488_v57 = vadd.f32 %v1579_v1, %v487_v54  ;;  %v648_v58 = vadd.f32 %v1579_v1, %v647_v56 }
 0x113   :  { %825 = vrot.lane.b32.xlu1 %v1766_v60, %s1291_s14  ;;  %823 = vrot.lane.b32.xlu0 %v1772_v0, %s1291_s14  ;;  %696 = vst.msk [vmem:[%s2360_s3 + $0xe8] sm:$0xff] %vm666_vm1, %v493_v53  ;;  %728 = vst.msk [vmem:[%s2360_s3 + $0x1e8] sm:$0xff] %vm666_vm1, %v653_v55 }
 0x114   :  { %695 = vst.msk [vmem:[%s2360_s3 + $0xe0] sm:$0xff] %vm666_vm1, %v488_v57  ;;  %727 = vst.msk [vmem:[%s2360_s3 + $0x1e0] sm:$0xff] %vm666_vm1, %v648_v58  ;;  %v1239_v59 = vpop.f32.mrb[30].mxu0  ;;  %v1287_v60 = vpop.f32.mrb[30].mxu1 }
 0x115   :  { %v503_v61 = vadd.f32 %v1239_v59, %v1579_v1  ;;  %v497_v63 = vpop.f32.mrb[31].mxu0  ;;  %v663_v0 = vadd.f32 %v1287_v60, %v1579_v1  ;;  %v657_v3 = vpop.f32.mrb[31].mxu1 }
 0x116   :  { %v498_v4 = vadd.f32 %v1579_v1, %v497_v63  ;;  %v658_v6 = vadd.f32 %v1579_v1, %v657_v3 }
 0x117   :  { %889 = vrot.lane.b32.xlu1 %v1769_v62, %s1291_s14  ;;  %887 = vrot.lane.b32.xlu0 %v1775_v2, %s1291_s14  ;;  %698 = vst.msk [vmem:[%s2360_s3 + $0xf8] sm:$0xff] %vm666_vm1, %v503_v61  ;;  %730 = vst.msk [vmem:[%s2360_s3 + $0x1f8] sm:$0xff] %vm666_vm1, %v663_v0 }
 0x118   :  { %697 = vst.msk [vmem:[%s2360_s3 + $0xf0] sm:$0xff] %vm666_vm1, %v498_v4  ;;  %729 = vst.msk [vmem:[%s2360_s3 + $0x1f0] sm:$0xff] %vm666_vm1, %v658_v6 }
 0x11b   :  { %829 = vrot.lane.b32.xlu1 %v1800_v5, %s1291_s14  ;;  %827 = vrot.lane.b32.xlu0 %v1806_v9, %s1291_s14 }
 0x11f   :  { %893 = vrot.lane.b32.xlu1 %v1803_v7, %s1291_s14  ;;  %891 = vrot.lane.b32.xlu0 %v1809_v10, %s1291_s14 }
 0x123   :  { %833 = vrot.lane.b32.xlu1 %v1834_v13, %s1291_s14  ;;  %831 = vrot.lane.b32.xlu0 %v1840_v17, %s1291_s14 }
 0x127   :  { %897 = vrot.lane.b32.xlu1 %v1837_v15, %s1291_s14  ;;  %895 = vrot.lane.b32.xlu0 %v1843_v18, %s1291_s14 }
 0x12b   :  { %837 = vrot.lane.b32.xlu1 %v1870_v21, %s1291_s14  ;;  %835 = vrot.lane.b32.xlu0 %v1876_v25, %s1291_s14 }
 0x12f   :  { %901 = vrot.lane.b32.xlu1 %v1873_v23, %s1291_s14  ;;  %899 = vrot.lane.b32.xlu0 %v1879_v26, %s1291_s14 }
 0x133   :  { %841 = vrot.lane.b32.xlu1 %v1906_v29, %s1291_s14  ;;  %839 = vrot.lane.b32.xlu0 %v1912_v33, %s1291_s14 }
 0x137   :  { %905 = vrot.lane.b32.xlu1 %v1909_v31, %s1291_s14  ;;  %903 = vrot.lane.b32.xlu0 %v1915_v34, %s1291_s14 }
 0x13b   :  { %845 = vrot.lane.b32.xlu1 %v1942_v37, %s1291_s14  ;;  %843 = vrot.lane.b32.xlu0 %v1948_v41, %s1291_s14 }
 0x13f   :  { %909 = vrot.lane.b32.xlu1 %v1945_v39, %s1291_s14  ;;  %907 = vrot.lane.b32.xlu0 %v1951_v42, %s1291_s14 }
 0x143   :  { %849 = vrot.lane.b32.xlu1 %v483_v45, %s1291_s14  ;;  %847 = vrot.lane.b32.xlu0 %v478_v49, %s1291_s14 }
 0x147   :  { %913 = vrot.lane.b32.xlu1 %v643_v47, %s1291_s14  ;;  %911 = vrot.lane.b32.xlu0 %v638_v50, %s1291_s14 }
 0x14b   :  { %853 = vrot.lane.b32.xlu1 %v493_v53, %s1291_s14  ;;  %851 = vrot.lane.b32.xlu0 %v488_v57, %s1291_s14 }
 0x14d   :  { %v862_v1 = vpop.permute.xlu1 %861  ;;  %v798_v62 = vpop.permute.xlu0 %797 }
 0x14e   :  { %1021 = vst.msk [vmem:[%s2361_s4 + $0x108] sm:$0xff] %vm987_vm2, %v862_v1  ;;  %989 = vst.msk [vmem:[%s2361_s4 + $0x8] sm:$0xff] %vm987_vm2, %v798_v62 }
 0x14f   :  { %917 = vrot.lane.b32.xlu1 %v653_v55, %s1291_s14  ;;  %915 = vrot.lane.b32.xlu0 %v648_v58, %s1291_s14 }
 0x151   :  { %v802_v2 = vpop.permute.xlu1 %801  ;;  %v796_v5 = vpop.permute.xlu0 %795 }
 0x152   :  { %991 = vst.msk [vmem:[%s2361_s4 + $0x18] sm:$0xff] %vm987_vm2, %v802_v2  ;;  %988 = vst.msk [vmem:[%s2361_s4] sm:$0xff] %vm987_vm2, %v796_v5 }
 0x153   :  { %857 = vrot.lane.b32.xlu1 %v503_v61, %s1291_s14  ;;  %855 = vrot.lane.b32.xlu0 %v498_v4, %s1291_s14 }
 0x155   :  { %v866_v7 = vpop.permute.xlu1 %865  ;;  %v860_v8 = vpop.permute.xlu0 %859 }
 0x156   :  { %1023 = vst.msk [vmem:[%s2361_s4 + $0x118] sm:$0xff] %vm987_vm2, %v866_v7  ;;  %1020 = vst.msk [vmem:[%s2361_s4 + $0x100] sm:$0xff] %vm987_vm2, %v860_v8 }
 0x157   :  { %921 = vrot.lane.b32.xlu1 %v663_v0, %s1291_s14  ;;  %919 = vrot.lane.b32.xlu0 %v658_v6, %s1291_s14 }
 0x159   :  { %v800_v9 = vpop.permute.xlu1 %799  ;;  %v864_v10 = vpop.permute.xlu0 %863 }
 0x15a   :  { %990 = vst.msk [vmem:[%s2361_s4 + $0x10] sm:$0xff] %vm987_vm2, %v800_v9  ;;  %1022 = vst.msk [vmem:[%s2361_s4 + $0x110] sm:$0xff] %vm987_vm2, %v864_v10 }
 0x15d   :  { %v806_v11 = vpop.permute.xlu1 %805  ;;  %v804_v12 = vpop.permute.xlu0 %803 }
 0x15e   :  { %993 = vst.msk [vmem:[%s2361_s4 + $0x28] sm:$0xff] %vm987_vm2, %v806_v11  ;;  %992 = vst.msk [vmem:[%s2361_s4 + $0x20] sm:$0xff] %vm987_vm2, %v804_v12 }
 0x161   :  { %v870_v13 = vpop.permute.xlu1 %869  ;;  %v868_v14 = vpop.permute.xlu0 %867 }
 0x162   :  { %1025 = vst.msk [vmem:[%s2361_s4 + $0x128] sm:$0xff] %vm987_vm2, %v870_v13  ;;  %1024 = vst.msk [vmem:[%s2361_s4 + $0x120] sm:$0xff] %vm987_vm2, %v868_v14 }
 0x165   :  { %v810_v15 = vpop.permute.xlu1 %809  ;;  %v808_v16 = vpop.permute.xlu0 %807 }
 0x166   :  { %995 = vst.msk [vmem:[%s2361_s4 + $0x38] sm:$0xff] %vm987_vm2, %v810_v15  ;;  %994 = vst.msk [vmem:[%s2361_s4 + $0x30] sm:$0xff] %vm987_vm2, %v808_v16 }
 0x169   :  { %v874_v17 = vpop.permute.xlu1 %873  ;;  %v872_v18 = vpop.permute.xlu0 %871 }
 0x16a   :  { %1027 = vst.msk [vmem:[%s2361_s4 + $0x138] sm:$0xff] %vm987_vm2, %v874_v17  ;;  %1026 = vst.msk [vmem:[%s2361_s4 + $0x130] sm:$0xff] %vm987_vm2, %v872_v18 }
 0x16d   :  { %v814_v19 = vpop.permute.xlu1 %813  ;;  %v812_v20 = vpop.permute.xlu0 %811 }
 0x16e   :  { %997 = vst.msk [vmem:[%s2361_s4 + $0x48] sm:$0xff] %vm987_vm2, %v814_v19  ;;  %996 = vst.msk [vmem:[%s2361_s4 + $0x40] sm:$0xff] %vm987_vm2, %v812_v20 }
 0x171   :  { %v878_v21 = vpop.permute.xlu1 %877  ;;  %v876_v22 = vpop.permute.xlu0 %875 }
 0x172   :  { %1029 = vst.msk [vmem:[%s2361_s4 + $0x148] sm:$0xff] %vm987_vm2, %v878_v21  ;;  %1028 = vst.msk [vmem:[%s2361_s4 + $0x140] sm:$0xff] %vm987_vm2, %v876_v22 }
 0x175   :  { %v818_v23 = vpop.permute.xlu1 %817  ;;  %v816_v24 = vpop.permute.xlu0 %815 }
 0x176   :  { %999 = vst.msk [vmem:[%s2361_s4 + $0x58] sm:$0xff] %vm987_vm2, %v818_v23  ;;  %998 = vst.msk [vmem:[%s2361_s4 + $0x50] sm:$0xff] %vm987_vm2, %v816_v24 }
 0x179   :  { %v882_v25 = vpop.permute.xlu1 %881  ;;  %v880_v26 = vpop.permute.xlu0 %879 }
 0x17a   :  { %1031 = vst.msk [vmem:[%s2361_s4 + $0x158] sm:$0xff] %vm987_vm2, %v882_v25  ;;  %1030 = vst.msk [vmem:[%s2361_s4 + $0x150] sm:$0xff] %vm987_vm2, %v880_v26 }
 0x17d   :  { %v822_v27 = vpop.permute.xlu1 %821  ;;  %v820_v28 = vpop.permute.xlu0 %819 }
 0x17e   :  { %1001 = vst.msk [vmem:[%s2361_s4 + $0x68] sm:$0xff] %vm987_vm2, %v822_v27  ;;  %1000 = vst.msk [vmem:[%s2361_s4 + $0x60] sm:$0xff] %vm987_vm2, %v820_v28 }
 0x181   :  { %v886_v29 = vpop.permute.xlu1 %885  ;;  %v884_v30 = vpop.permute.xlu0 %883 }
 0x182   :  { %1033 = vst.msk [vmem:[%s2361_s4 + $0x168] sm:$0xff] %vm987_vm2, %v886_v29  ;;  %1032 = vst.msk [vmem:[%s2361_s4 + $0x160] sm:$0xff] %vm987_vm2, %v884_v30 }
 0x185   :  { %v826_v31 = vpop.permute.xlu1 %825  ;;  %v824_v32 = vpop.permute.xlu0 %823 }
 0x186   :  { %1003 = vst.msk [vmem:[%s2361_s4 + $0x78] sm:$0xff] %vm987_vm2, %v826_v31  ;;  %1002 = vst.msk [vmem:[%s2361_s4 + $0x70] sm:$0xff] %vm987_vm2, %v824_v32 }
 0x189   :  { %v890_v33 = vpop.permute.xlu1 %889  ;;  %v888_v34 = vpop.permute.xlu0 %887 }
 0x18a   :  { %1035 = vst.msk [vmem:[%s2361_s4 + $0x178] sm:$0xff] %vm987_vm2, %v890_v33  ;;  %1034 = vst.msk [vmem:[%s2361_s4 + $0x170] sm:$0xff] %vm987_vm2, %v888_v34 }
 0x18d   :  { %v830_v35 = vpop.permute.xlu1 %829  ;;  %v828_v36 = vpop.permute.xlu0 %827 }
 0x18e   :  { %1005 = vst.msk [vmem:[%s2361_s4 + $0x88] sm:$0xff] %vm987_vm2, %v830_v35  ;;  %1004 = vst.msk [vmem:[%s2361_s4 + $0x80] sm:$0xff] %vm987_vm2, %v828_v36 }
 0x191   :  { %v894_v37 = vpop.permute.xlu1 %893  ;;  %v892_v38 = vpop.permute.xlu0 %891 }
 0x192   :  { %1037 = vst.msk [vmem:[%s2361_s4 + $0x188] sm:$0xff] %vm987_vm2, %v894_v37  ;;  %1036 = vst.msk [vmem:[%s2361_s4 + $0x180] sm:$0xff] %vm987_vm2, %v892_v38 }
 0x195   :  { %v834_v39 = vpop.permute.xlu1 %833  ;;  %v832_v40 = vpop.permute.xlu0 %831 }
 0x196   :  { %1007 = vst.msk [vmem:[%s2361_s4 + $0x98] sm:$0xff] %vm987_vm2, %v834_v39  ;;  %1006 = vst.msk [vmem:[%s2361_s4 + $0x90] sm:$0xff] %vm987_vm2, %v832_v40 }
 0x199   :  { %v898_v41 = vpop.permute.xlu1 %897  ;;  %v896_v42 = vpop.permute.xlu0 %895 }
 0x19a   :  { %1039 = vst.msk [vmem:[%s2361_s4 + $0x198] sm:$0xff] %vm987_vm2, %v898_v41  ;;  %1038 = vst.msk [vmem:[%s2361_s4 + $0x190] sm:$0xff] %vm987_vm2, %v896_v42 }
 0x19d   :  { %v838_v43 = vpop.permute.xlu1 %837  ;;  %v836_v44 = vpop.permute.xlu0 %835 }
 0x19e   :  { %1009 = vst.msk [vmem:[%s2361_s4 + $0xa8] sm:$0xff] %vm987_vm2, %v838_v43  ;;  %1008 = vst.msk [vmem:[%s2361_s4 + $0xa0] sm:$0xff] %vm987_vm2, %v836_v44 }
 0x1a1   :  { %v902_v45 = vpop.permute.xlu1 %901  ;;  %v900_v46 = vpop.permute.xlu0 %899 }
 0x1a2   :  { %1041 = vst.msk [vmem:[%s2361_s4 + $0x1a8] sm:$0xff] %vm987_vm2, %v902_v45  ;;  %1040 = vst.msk [vmem:[%s2361_s4 + $0x1a0] sm:$0xff] %vm987_vm2, %v900_v46 }
 0x1a5   :  { %v842_v47 = vpop.permute.xlu1 %841  ;;  %v840_v48 = vpop.permute.xlu0 %839 }
 0x1a6   :  { %1011 = vst.msk [vmem:[%s2361_s4 + $0xb8] sm:$0xff] %vm987_vm2, %v842_v47  ;;  %1010 = vst.msk [vmem:[%s2361_s4 + $0xb0] sm:$0xff] %vm987_vm2, %v840_v48 }
 0x1a9   :  { %v906_v49 = vpop.permute.xlu1 %905  ;;  %v904_v50 = vpop.permute.xlu0 %903 }
 0x1aa   :  { %1043 = vst.msk [vmem:[%s2361_s4 + $0x1b8] sm:$0xff] %vm987_vm2, %v906_v49  ;;  %1042 = vst.msk [vmem:[%s2361_s4 + $0x1b0] sm:$0xff] %vm987_vm2, %v904_v50 }
 0x1ad   :  { %v846_v51 = vpop.permute.xlu1 %845  ;;  %v844_v52 = vpop.permute.xlu0 %843 }
 0x1ae   :  { %1013 = vst.msk [vmem:[%s2361_s4 + $0xc8] sm:$0xff] %vm987_vm2, %v846_v51  ;;  %1012 = vst.msk [vmem:[%s2361_s4 + $0xc0] sm:$0xff] %vm987_vm2, %v844_v52 }
 0x1b1   :  { %v910_v53 = vpop.permute.xlu1 %909  ;;  %v908_v54 = vpop.permute.xlu0 %907 }
 0x1b2   :  { %1045 = vst.msk [vmem:[%s2361_s4 + $0x1c8] sm:$0xff] %vm987_vm2, %v910_v53  ;;  %1044 = vst.msk [vmem:[%s2361_s4 + $0x1c0] sm:$0xff] %vm987_vm2, %v908_v54 }
 0x1b5   :  { %v850_v55 = vpop.permute.xlu1 %849  ;;  %v848_v56 = vpop.permute.xlu0 %847 }
 0x1b6   :  { %1015 = vst.msk [vmem:[%s2361_s4 + $0xd8] sm:$0xff] %vm987_vm2, %v850_v55  ;;  %1014 = vst.msk [vmem:[%s2361_s4 + $0xd0] sm:$0xff] %vm987_vm2, %v848_v56 }
 0x1b9   :  { %v914_v57 = vpop.permute.xlu1 %913  ;;  %v912_v58 = vpop.permute.xlu0 %911 }
 0x1ba   :  { %1047 = vst.msk [vmem:[%s2361_s4 + $0x1d8] sm:$0xff] %vm987_vm2, %v914_v57  ;;  %1046 = vst.msk [vmem:[%s2361_s4 + $0x1d0] sm:$0xff] %vm987_vm2, %v912_v58 }
 0x1bd   :  { %v854_v59 = vpop.permute.xlu1 %853  ;;  %v852_v60 = vpop.permute.xlu0 %851 }
 0x1be   :  { %1017 = vst.msk [vmem:[%s2361_s4 + $0xe8] sm:$0xff] %vm987_vm2, %v854_v59  ;;  %1016 = vst.msk [vmem:[%s2361_s4 + $0xe0] sm:$0xff] %vm987_vm2, %v852_v60 }
 0x1c1   :  { %v918_v61 = vpop.permute.xlu1 %917  ;;  %v916_v63 = vpop.permute.xlu0 %915 }
 0x1c2   :  { %1049 = vst.msk [vmem:[%s2361_s4 + $0x1e8] sm:$0xff] %vm987_vm2, %v918_v61  ;;  %1048 = vst.msk [vmem:[%s2361_s4 + $0x1e0] sm:$0xff] %vm987_vm2, %v916_v63 }
 0x1c5   :  { %v858_v0 = vpop.permute.xlu1 %857  ;;  %v856_v3 = vpop.permute.xlu0 %855 }
 0x1c6   :  { %1019 = vst.msk [vmem:[%s2361_s4 + $0xf8] sm:$0xff] %vm987_vm2, %v858_v0  ;;  %1018 = vst.msk [vmem:[%s2361_s4 + $0xf0] sm:$0xff] %vm987_vm2, %v856_v3 }
 0x1c9   :  { %v922_v4 = vpop.permute.xlu1 %921  ;;  %v920_v6 = vpop.permute.xlu0 %919 }
 0x1ca   :  { %1051 = vst.msk [vmem:[%s2361_s4 + $0x1f8] sm:$0xff] %vm987_vm2, %v922_v4  ;;  %1050 = vst.msk [vmem:[%s2361_s4 + $0x1f0] sm:$0xff] %vm987_vm2, %v920_v6 }

</bundles_post_ra>
